<compile_context>
chip_gen: v6e
topology: v6e:2x2x1
jax: 0.10.0
libtpu: 0.0.40
codegen_flags: <defaults>
</compile_context>

<pallas_src>
import math

import jax
import jax.numpy as jnp
from jax.experimental import pallas as pl
from jax.experimental.pallas import tpu as pltpu


def _leaf_param_kernel(bias_ref, out_ref):
    # bias_ref: (1, L) VMEM-resident block; out_ref: (row_tile, L) output tile.
    out_ref[...] = jnp.broadcast_to(bias_ref[...], out_ref.shape)


def _round_up(x, m):
    return ((x + m - 1) // m) * m


def _sublane_packing(dtype):
    # Native second-to-last-dim packing: 8 rows (32-bit), 16 (bf16), 32 (int8/fp8).
    return max(8, (4 // jnp.dtype(dtype).itemsize) * 8)


def _choose_row_tile(n_rows, lane_width, dtype, target_block_bytes, max_block_bytes):
    """Output row tile: ~target-sized blocks (amortizes the ~0.35 us per-grid-step
    overhead), dtype-aware sublane packing, capped at max_block_bytes."""
    packing = _sublane_packing(dtype)
    row_bytes = max(1, lane_width * jnp.dtype(dtype).itemsize)
    tile = (target_block_bytes // row_bytes) // packing * packing
    max_tile = (max_block_bytes // row_bytes) // packing * packing
    tile = max(min(tile, max_tile), packing)
    # No point tiling past the (packing-rounded) total rows.
    tile = min(tile, _round_up(n_rows, packing))
    return max(tile, packing)


def _pallas_row_broadcast(bias2d, n_rows, lanes, target_block_bytes, max_block_bytes):
    """Broadcast a (1, lanes) row to (n_rows, lanes) with a row-tiled Pallas kernel."""
    dtype = bias2d.dtype
    itemsize = jnp.dtype(dtype).itemsize
    packing = _sublane_packing(dtype)

    row_tile = _choose_row_tile(n_rows, lanes, dtype,
                                target_block_bytes, max_block_bytes)
    if n_rows <= row_tile:
        # Single full-extent block (always a legal block shape); no forced split
        # on single-TC chips.
        row_tile = n_rows
        grid_steps = 1
    else:
        grid_steps = pl.cdiv(n_rows, row_tile)
        if grid_steps % 2 == 1:
            # Odd multi-step grids leave one v7x TensorCore doing an extra step
            # while the other idles; best-effort rebalance to an even count.
            row_tile = max(packing,
                           _round_up(pl.cdiv(n_rows, grid_steps + 1), packing))
            grid_steps = pl.cdiv(n_rows, row_tile)

    out_block_bytes = row_tile * lanes * itemsize
    bias_block_bytes = lanes * itemsize
    # Double-buffered output + bias block + margin; with the 16 MiB block cap
    # this stays under the per-core VMEM of every generation.
    vmem_limit = int(min(48 << 20,
                         2 * out_block_bytes + 2 * bias_block_bytes + (4 << 20)))
    total_bytes = n_rows * lanes * itemsize

    return pl.pallas_call(
        _leaf_param_kernel,
        out_shape=jax.ShapeDtypeStruct((n_rows, lanes), dtype),
        grid_spec=pltpu.PrefetchScalarGridSpec(
            num_scalar_prefetch=0,
            grid=(grid_steps,),  # no host-side pad: ragged edge block is masked
            # Constant index_map -> the bias block is fetched once and stays
            # resident in VMEM across all grid steps.
            in_specs=[pl.BlockSpec((1, lanes), lambda i: (0, 0))],
            out_specs=pl.BlockSpec((row_tile, lanes), lambda i: (i, 0)),
        ),
        compiler_params=pltpu.CompilerParams(
            dimension_semantics=("parallel",),
            vmem_limit_bytes=vmem_limit,
        ),
        # Pure memory traffic: lets XLA overlap neighboring compute with the writeback.
        cost_estimate=pl.CostEstimate(flops=0, transcendentals=0,
                                      bytes_accessed=total_bytes + bias_block_bytes),
    )(bias2d)


_MIN_KERNEL_BYTES = 256 << 10  # below this, an XLA broadcast beats the pallas_call overhead


def leaf_parameter_forward(inputs, bias, *,
                           min_kernel_bytes=_MIN_KERNEL_BYTES,
                           target_block_bytes=8 << 20,
                           max_block_bytes=16 << 20):
    """Expand `bias` (shape (F,)) to inputs.shape[:-1] + (F,)."""
    batch_shape = tuple(inputs.shape[:-1])
    F = int(bias.shape[0])
    dtype = bias.dtype
    itemsize = jnp.dtype(dtype).itemsize
    out_shape_full = batch_shape + (F,)

    b_flat = math.prod(batch_shape)
    if b_flat == 0 or F == 0:
        return jnp.zeros(out_shape_full, dtype)

    total_bytes = b_flat * F * itemsize
    if total_bytes < min_kernel_bytes:
        # Tiny output: the custom-call + pipeline prologue dominates; a plain
        # XLA broadcast is sub-microsecond and can fuse into the consumer.
        return jnp.broadcast_to(bias, out_shape_full)

    # Lane-dense layout: smallest L that is a multiple of both F and 128.
    L = (F * 128) // math.gcd(F, 128)
    rep = L // F
    # A minimal 8-row lane-dense block must fit the block-byte budget.
    lane_dense_ok = L * itemsize * 8 <= max_block_bytes

    if lane_dense_ok:
        bias_row = (jnp.tile(bias, rep) if rep > 1 else bias).reshape(1, L)
        bulk_b = (b_flat // rep) * rep

        if bulk_b == b_flat:
            flat = _pallas_row_broadcast(bias_row, (b_flat * F) // L, L,
                                         target_block_bytes, max_block_bytes)
            # Row-major (R, L) and (b_flat, F) share the same flat layout, so
            # this reshape is metadata-only (no extra HBM copy).
            return flat.reshape(out_shape_full)

        if bulk_b > 0:
            # Ragged batch: lane-dense kernel on the bulk + tiny (< rep rows)
            # jnp tail, instead of narrow (lanes=F) masked stores on everything.
            # NOTE: the concatenate re-copies the bulk once; still cheaper than
            # the ~4.5x narrow-store penalty on the whole output write path.
            bulk = _pallas_row_broadcast(bias_row, (bulk_b * F) // L, L,
                                         target_block_bytes, max_block_bytes)
            bulk = bulk.reshape(bulk_b, F)
            tail = jnp.broadcast_to(bias, (b_flat - bulk_b, F))
            return jnp.concatenate([bulk, tail], axis=0).reshape(out_shape_full)

        return jnp.broadcast_to(bias, out_shape_full)

    # Safety net for pathological F (lane-dense slab infeasible): full-extent
    # last dim = F; edge lanes are masked, but F is huge here so the waste is tiny.
    flat = _pallas_row_broadcast(bias.reshape(1, F), b_flat, F,
                                 target_block_bytes, max_block_bytes)
    return flat.reshape(out_shape_full)


if __name__ == "__main__":
    key = jax.random.PRNGKey(0)
    in_features = 32

    # PyTorch __init__ uses zeros; use a deterministic nonzero bias so the
    # broadcast is actually exercised / verifiable.
    bias = jax.random.normal(key, (in_features,), dtype=jnp.float32)

    # 1) Small input consistent with the module; force the Pallas lane-dense path.
    x = jax.random.normal(jax.random.fold_in(key, 1), (2, 8, 32), dtype=jnp.float32)
    out = jax.block_until_ready(leaf_parameter_forward(x, bias, min_kernel_bytes=0))
    expected = jnp.broadcast_to(bias, x.shape[:-1] + (in_features,))
    assert out.shape == (2, 8, in_features), out.shape
    assert out.dtype == bias.dtype
    assert jnp.array_equal(out, expected), "lane-dense path mismatch"

    # 2) Same input through the default dispatch (tiny-output jnp shortcut).
    out_s = jax.block_until_ready(leaf_parameter_forward(x, bias))
    assert jnp.array_equal(out_s, expected), "tiny-output shortcut mismatch"

    # 3) Ragged batch (b_flat % rep != 0): lane-dense bulk kernel + tiny jnp tail.
    x2 = jax.random.normal(jax.random.fold_in(key, 2), (5, 32), dtype=jnp.float32)
    out2 = jax.block_until_ready(leaf_parameter_forward(x2, bias, min_kernel_bytes=0))
    assert jnp.array_equal(out2, jnp.broadcast_to(bias, (5, in_features))), \
        "ragged bulk+tail path mismatch"

    # 4) Multi-step grid with odd->even rebalance and a masked ragged edge block
    #    (small block-byte overrides keep the test shapes modest).
    x3 = jnp.zeros((3, 1000, 32), dtype=jnp.float32)
    out3 = jax.block_until_ready(
        leaf_parameter_forward(x3, bias,
                               target_block_bytes=128 << 10,
                               max_block_bytes=256 << 10))
    assert jnp.array_equal(out3, jnp.broadcast_to(bias, (3, 1000, in_features))), \
        "multi-step grid path mismatch"

    print("KERNEL_OK")
</pallas_src>

<mosaic_0001>
module attributes {stable_mosaic.version = 11 : i64} {
  func.func @_leaf_param_kernel(%arg0: i32, %arg1: memref<1x128xf32, #tpu.memory_space<vmem>>, %arg2: memref<4x128xf32, #tpu.memory_space<vmem>>) attributes {dimension_semantics = [#tpu.dimension_semantics<parallel>], iteration_bounds = array<i64: 1>, scalar_prefetch = 0 : i64, scratch_operands = 0 : i64, tpu.core_type = #tpu.core_type<tc>, window_params = [{pipeline_mode = #tpu.pipeline_mode<synchronous>, transform_indices = @transform_0, window_bounds = array<i64: 1, 128>}, {transform_indices = @transform_1, window_bounds = array<i64: 4, 128>}]} {
    %c0 = arith.constant 0 : index
    %c0_0 = arith.constant 0 : index
    %0 = vector.load %arg1[%c0, %c0_0] : memref<1x128xf32, #tpu.memory_space<vmem>>, vector<1x128xf32>
    %1 = vector.shape_cast %0 : vector<1x128xf32> to vector<1x128xf32>
    %2 = vector.broadcast %1 : vector<1x128xf32> to vector<4x128xf32>
    %c0_1 = arith.constant 0 : index
    %c0_2 = arith.constant 0 : index
    %3 = vector.load %arg2[%c0_1, %c0_2] : memref<4x128xf32, #tpu.memory_space<vmem>>, vector<4x128xf32>
    tpu.vector_store %arg2[%c0_1, %c0_2], %2 {strides = array<i32>} : memref<4x128xf32, #tpu.memory_space<vmem>>, vector<4x128xf32>,
    return
  }
  func.func @transform_0(%arg0: i32) -> (i32, i32) {
    %c0_i32 = arith.constant 0 : i32
    %c0_i32_0 = arith.constant 0 : i32
    %c0_i32_1 = arith.constant 0 : i32
    return %c0_i32, %c0_i32_0 : i32, i32
  }
  func.func @transform_1(%arg0: i32) -> (i32, i32) {
    %c0_i32 = arith.constant 0 : i32
    %c0_i32_0 = arith.constant 0 : i32
    return %arg0, %c0_i32 : i32, i32
  }
}

</mosaic_0001>

<bundles_post_ra>
// kernel: tpu_custom_call.1
= control target key start
LH: loop header
LB: loop body
LE: loop exit
PB: predicated region body
PF: predicated region fallthrough
CT: control target
= control target key end

     0   :  { %6 = vsyncpa [#allocation3], 0  ;;  %s109_s0 = inlined_call_operand.hbm [shape: f32[1,128], index: 0, kind: input, shape index: {}]   ;;  %s110_s1 = inlined_call_operand.hbm [shape: f32[4,128], index: 1, kind: output, shape index: {}]  }
   0x1   :  { %7 = vsyncpa [#allocation4], 0  ;;  %s91_s6 = smov [#allocation2]  }
   0x2   :  { %s14_s7 = sshll.u32 %s91_s6, 4  ;;  %s15_s7 = int_to_ptr.vmem [resolvable:$true] %s14_s7 }
   0x3   :  { %s55_s8 = scalar_lea.vmem %s15_s7, 16  ;;  %s59_s9 = scalar_lea.vmem %s15_s7, 32 }
   0x4   :  { %p56_p0 = scmp.ne.s32.totalorder %s15_s7, %s55_s8  ;;  %p60_p1 = scmp.lt.s32.totalorder %s15_s7, %s15_s7 }
   0x5   :  { %p61_p2 = scmp.lt.s32.totalorder %s59_s9, %s55_s8 }
   0x7   :  { %p62_p3 = por %p61_p2, %p60_p1 }
   0x9   :  { %p63_p4 = pnand %p62_p3, %p56_p0 }
   0xb   :  { %66 = shalt.err (!%p63_p4)
}
   0xc   :  { %17 = dma.hbm_to_vmem [thread:$0]  %s109_s0, 16, %s15_s7, [#allocation3]  }
   0xd   :  { %87 = dma.done.wait [#allocation3], 16  }
   0xe   :  { %88 = vsyncadd [#allocation3], 4294967280  ;;  %s92_s12 = smov [#allocation5]   ;;  %v44_v0 = vld [vmem:[#allocation2] ss:$0 sm:$0xff] }
   0xf   :  { %s35_s13 = sshll.u32 %s92_s12, 4  ;;  %28 = vst [vmem:[#allocation5] sm:$0xf] %v44_v0  ;;  %s36_s13 = int_to_ptr.vmem [resolvable:$true] %s35_s13 }
  0x10   :  { %s67_s14 = scalar_lea.vmem %s36_s13, 64  ;;  %p72_p6 = scmp.lt.s32.totalorder %s36_s13, %s36_s13 }
  0x11   :  { %p68_p5 = scmp.ne.s32.totalorder %s36_s13, %s67_s14  ;;  %p73_p7 = scmp.lt.s32.totalorder %s67_s14, %s67_s14 }
  0x13   :  { %p74_p8 = por %p73_p7, %p72_p6 }
  0x15   :  { %p75_p9 = pnand %p74_p8, %p68_p5 }
  0x17   :  { %78 = shalt.err (!%p75_p9)
}
  0x18   :  { %38 = dma.vmem_to_hbm [thread:$0]  %s36_s13, 64, %s110_s1, [#allocation4]  }
  0x19   :  { %89 = dma.done.wait [#allocation4], 64  }
  0x1a   :  { %90 = vsyncadd [#allocation4], 4294967232 }
  0x1b   :  { %42 = vsyncpa [#allocation3], 1 }
  0x1c   :  { %43 = vsyncpa [#allocation4], 1 }

</bundles_post_ra>
